<compile_context>
chip_gen: v5e
topology: v5e:2x2
jax: 0.10.0
libtpu: 0.0.40
codegen_flags: <defaults>
</compile_context>

<pallas_src>
import functools

import jax
import jax.numpy as jnp
from jax.experimental import pallas as pl
from jax.experimental.pallas import tpu as pltpu


def transition_kernel(dtot, use_residual, num_subtiles,
                      x_ref, w_a_ref, b_a_ref, w1_ref, b1_ref,
                      wf_ref, bf_ref, w2_ref, b2_ref, out_ref):
    cd = w_a_ref.dtype                    # MXU operand dtype (bf16 prod / f32 check)
    # bf16 -> default single-pass; f32 check path -> HIGHEST (exact reference).
    prec = jax.lax.Precision.HIGHEST if cd == jnp.float32 else None
    tm = x_ref.shape[0]
    out_pad = out_ref.shape[1]
    rows = tm // num_subtiles

    # Unrolled sub-tiles: on v5e/v6e the MXU result path is a FIFO (MRF); a
    # strictly dependent 4-dot chain over one big tile can expose pop->VPU->push
    # latency.  Two independent sub-tiles give the scheduler work to interleave.
    for t in range(num_subtiles):
        sl = pl.ds(t * rows, rows)
        x = x_ref[sl, :]                  # (rows, 128) f32 = [s | a | zeros]

        # Layer A: x @ blockdiag(I_Dtot, per-agent W_ae, 0) + [0 | b_ae tiled].
        # ReLU only on action-embedding lanes (col >= Dtot); s passes through.
        t0 = jnp.dot(x.astype(cd), w_a_ref[...],
                     preferred_element_type=jnp.float32, precision=prec) + b_a_ref[...]
        col = jax.lax.broadcasted_iota(jnp.int32, t0.shape, 1)
        x1 = jnp.where(col >= dtot, jnp.maximum(t0, 0.0), t0)   # (rows, Dtot + A*E)

        # Fused first hidden layer: blockdiag(W_se1, W_ja1) -> [z_h | ja_h], ReLU.
        u = jnp.dot(x1.astype(cd), w1_ref[...],
                    preferred_element_type=jnp.float32, precision=prec) + b1_ref[...]
        u = jnp.maximum(u, 0.0)                                  # (rows, 2H)

        # blockdiag(W_se2, W_ja2) and network[0] (W_n1) have no nonlinearity
        # between them -> folded offline into one (2H, H) weight + bias.
        h = jnp.dot(u.astype(cd), wf_ref[...],
                    preferred_element_type=jnp.float32, precision=prec) + bf_ref[...]
        h = jnp.maximum(h, 0.0)                                  # (rows, H)

        # Final layer, zero-padded to 128 output lanes -> unmasked lane-dense store.
        nxt = jnp.dot(h.astype(cd), w2_ref[...],
                      preferred_element_type=jnp.float32, precision=prec) + b2_ref[...]

        if use_residual:
            # Residual as a VPU masked add (no 5th MXU dot), exact in f32:
            # x lanes [0, Dtot) hold s, and in_pad == out_pad == 128.
            col_o = jax.lax.broadcasted_iota(jnp.int32, (rows, out_pad), 1)
            nxt = nxt + jnp.where(col_o < dtot, x, 0.0)

        out_ref[sl, :] = nxt.astype(out_ref.dtype)


def transition_forward(state_repre, actions, packed, *, use_residual=True,
                       tm=2048, min_grid_steps=4, out_dtype=jnp.float32):
    """state_repre: (B,S,A,D), actions: (B,S,A,n_actions) -> (B,S,A,D).

    out_dtype=jnp.bfloat16 halves the padded-slab writeback (useful on v5e);
    the wrapper casts back to f32 after slicing.
    """
    B, S, A, D = state_repre.shape
    NA = actions.shape[-1]
    Dtot = A * D
    Din = Dtot + A * NA
    M = B * S

    w_a, b_a, w1, b1, wf, bf, w2p, b2p = packed
    in_pad = w_a.shape[0]
    out_pad = w2p.shape[1]
    assert (not use_residual) or (in_pad == out_pad), \
        "masked-add residual requires matching input/output lane padding"

    # Tile choice: big tiles amortize per-grid-step overhead, but whenever the
    # problem needs more than one tile we force >= min_grid_steps balanced
    # steps so v7x's two TensorCores both get work (no effect on v5e/v6e).
    n_steps = pl.cdiv(M, tm)
    if n_steps > 1:
        n_steps = max(n_steps, min_grid_steps)
    tm_eff = max(8, pl.cdiv(pl.cdiv(M, n_steps), 8) * 8)
    m_pad = pl.cdiv(M, tm_eff) * tm_eff

    # Single lane-dense input slab [s | a | zeros] (zeros feed zero weight rows,
    # and the 128-lane container makes the residual a pure-VPU masked add).
    s2 = state_repre.reshape(M, Dtot).astype(jnp.float32)
    a2 = actions.reshape(M, A * NA).astype(jnp.float32)
    x_in = jnp.concatenate([s2, a2], axis=-1)
    x_pad = jnp.pad(x_in, ((0, m_pad - M), (0, in_pad - Din)))

    # Sub-tile the row block inside the kernel when it is large enough to matter.
    num_subtiles = 2 if (tm_eff % 16 == 0 and tm_eff >= 512) else 1

    flops = 2 * m_pad * (in_pad * w_a.shape[1] + w1.shape[0] * w1.shape[1]
                         + wf.shape[0] * wf.shape[1] + w2p.shape[0] * out_pad)
    bytes_acc = (4 * m_pad * in_pad + jnp.dtype(out_dtype).itemsize * m_pad * out_pad
                 + sum(int(z.size) * z.dtype.itemsize for z in packed))

    full = lambda arr: pl.BlockSpec(arr.shape, lambda i: (0, 0))
    kernel = functools.partial(transition_kernel, Dtot, use_residual, num_subtiles)

    out = pl.pallas_call(
        kernel,
        out_shape=jax.ShapeDtypeStruct((m_pad, out_pad), out_dtype),
        grid_spec=pltpu.PrefetchScalarGridSpec(
            num_scalar_prefetch=0,
            grid=(m_pad // tm_eff,),
            in_specs=[pl.BlockSpec((tm_eff, in_pad), lambda i: (i, 0)),
                      full(w_a), full(b_a), full(w1), full(b1),
                      full(wf), full(bf), full(w2p), full(b2p)],
            out_specs=pl.BlockSpec((tm_eff, out_pad), lambda i: (i, 0)),
        ),
        compiler_params=pltpu.CompilerParams(
            dimension_semantics=("parallel",)),
        cost_estimate=pl.CostEstimate(flops=int(flops), transcendentals=0,
                                      bytes_accessed=int(bytes_acc)),
    )(x_pad, w_a, b_a, w1, b1, wf, bf, w2p, b2p)

    return out[:M, :Dtot].astype(jnp.float32).reshape(B, S, A, D)


def make_raw_params(key, *, n_agents, n_actions, action_embed_dim,
                    state_repre_dim, model_hidden_dim):
    """Deterministic synthetic weights, stored (in, out) so y = x @ W + b."""
    A, NA, E = n_agents, n_actions, action_embed_dim
    D, H = state_repre_dim, model_hidden_dim
    Dtot = A * D
    ks = jax.random.split(key, 14)
    u = lambda k, shape, fan_in: jax.random.uniform(
        k, shape, jnp.float32, -1.0, 1.0) / jnp.sqrt(jnp.float32(fan_in))
    return dict(
        w_ae=u(ks[0], (NA, E), NA),        b_ae=u(ks[1], (E,), NA),
        w_ja1=u(ks[2], (A * E, H), A * E), b_ja1=u(ks[3], (H,), A * E),
        w_ja2=u(ks[4], (H, H), H),         b_ja2=u(ks[5], (H,), H),
        w_se1=u(ks[6], (Dtot, H), Dtot),   b_se1=u(ks[7], (H,), Dtot),
        w_se2=u(ks[8], (H, H), H),         b_se2=u(ks[9], (H,), H),
        w_n1=u(ks[10], (2 * H, H), 2 * H), b_n1=u(ks[11], (H,), 2 * H),
        w_n2=u(ks[12], (H, Dtot), H),      b_n2=u(ks[13], (Dtot,), H),
    )


def pack_params(raw, *, n_agents, n_actions, action_embed_dim, state_repre_dim,
                model_hidden_dim, compute_dtype=jnp.bfloat16):
    """Pack raw per-layer weights into the fused block-diagonal kernel weights.

    compute_dtype=bf16 is the production path (single-pass MXU, f32 accumulate);
    biases stay f32 (bias adds / ReLU / residual are f32 on the VPU).
    """
    A, NA, E = n_agents, n_actions, action_embed_dim
    D, H = state_repre_dim, model_hidden_dim
    Dtot, AE = A * D, A * E
    Din = Dtot + A * NA
    in_pad = pl.cdiv(max(Din, 128), 128) * 128     # lane-dense input container
    out_pad = pl.cdiv(max(Dtot, 128), 128) * 128   # lane-dense output container
    hi = jax.lax.Precision.HIGHEST

    # Layer A: blockdiag(I_Dtot, per-agent W_ae), zero rows for the pad lanes;
    # bias [0 | b_ae tiled A times].
    w_a = jnp.zeros((in_pad, Dtot + AE), jnp.float32)
    w_a = w_a.at[:Dtot, :Dtot].set(jnp.eye(Dtot, dtype=jnp.float32))
    for i in range(A):
        w_a = w_a.at[Dtot + i * NA:Dtot + (i + 1) * NA,
                     Dtot + i * E:Dtot + (i + 1) * E].set(raw["w_ae"])
    b_a = jnp.concatenate([jnp.zeros((Dtot,), jnp.float32),
                           jnp.tile(raw["b_ae"], A)]).reshape(1, -1)

    # Fused hidden layer 1: blockdiag(W_se1, W_ja1); bias [b_se1 | b_ja1].
    w1 = jnp.zeros((Dtot + AE, 2 * H), jnp.float32)
    w1 = w1.at[:Dtot, :H].set(raw["w_se1"])
    w1 = w1.at[Dtot:, H:].set(raw["w_ja1"])
    b1 = jnp.concatenate([raw["b_se1"], raw["b_ja1"]]).reshape(1, -1)

    # blockdiag(W_se2, W_ja2) followed (with no nonlinearity) by network[0]:
    # fold into one (2H, H) weight + bias.
    w2blk = jnp.zeros((2 * H, 2 * H), jnp.float32)
    w2blk = w2blk.at[:H, :H].set(raw["w_se2"])
    w2blk = w2blk.at[H:, H:].set(raw["w_ja2"])
    b2cat = jnp.concatenate([raw["b_se2"], raw["b_ja2"]])
    wf = jnp.dot(w2blk, raw["w_n1"], precision=hi)
    bf = (jnp.dot(b2cat, raw["w_n1"], precision=hi) + raw["b_n1"]).reshape(1, -1)

    # Final layer, zero-padded to a lane-dense (H, 128) weight / (1, 128) bias.
    w2p = jnp.zeros((H, out_pad), jnp.float32).at[:, :Dtot].set(raw["w_n2"])
    b2p = jnp.zeros((1, out_pad), jnp.float32).at[0, :Dtot].set(raw["b_n2"])

    cd = compute_dtype
    return (w_a.astype(cd), b_a, w1.astype(cd), b1, wf.astype(cd), bf,
            w2p.astype(cd), b2p)


def reference_forward(state_repre, actions, raw, *, use_residual=True):
    """Pure-JAX reference mirroring the PyTorch forward (state_encoder='ob_ind_ae')."""
    hi = jax.lax.Precision.HIGHEST
    mm = lambda a, w: jnp.dot(a, w, precision=hi)
    B, S, A, D = state_repre.shape
    s = state_repre.reshape(B, S, A * D)
    ae = mm(actions, raw["w_ae"]) + raw["b_ae"]            # (B,S,A,E)
    ae = jax.nn.relu(ae.reshape(B, S, -1))
    ja = mm(jax.nn.relu(mm(ae, raw["w_ja1"]) + raw["b_ja1"]), raw["w_ja2"]) + raw["b_ja2"]
    z = mm(jax.nn.relu(mm(s, raw["w_se1"]) + raw["b_se1"]), raw["w_se2"]) + raw["b_se2"]
    net_in = jnp.concatenate([z, ja], axis=-1)
    nxt = mm(jax.nn.relu(mm(net_in, raw["w_n1"]) + raw["b_n1"]), raw["w_n2"]) + raw["b_n2"]
    if use_residual:
        nxt = nxt + s
    return nxt.reshape(B, S, A, D)


# TODO(synk): reward_predictor / predict_reward is a separate method (not part of
# forward) and is intentionally not implemented here.

if __name__ == "__main__":
    # args
    n_agents, n_actions = 3, 5
    action_embed_dim, state_repre_dim, model_hidden_dim = 8, 6, 32
    use_residual = True
    B, S = 2, 8  # M = 16 rows -> single grid step

    dims = dict(n_agents=n_agents, n_actions=n_actions,
                action_embed_dim=action_embed_dim,
                state_repre_dim=state_repre_dim,
                model_hidden_dim=model_hidden_dim)

    key = jax.random.PRNGKey(0)
    k_p, k_s, k_a = jax.random.split(key, 3)
    raw = make_raw_params(k_p, **dims)

    state_repre = jax.random.normal(k_s, (B, S, n_agents, state_repre_dim), jnp.float32)
    actions = jax.random.normal(k_a, (B, S, n_agents, n_actions), jnp.float32)

    ref = reference_forward(state_repre, actions, raw, use_residual=use_residual)

    # Production path: bf16 MXU operands, f32 accumulation / bias / ReLU / residual.
    packed_bf16 = pack_params(raw, **dims)   # compute_dtype defaults to bf16
    out_bf16 = jax.block_until_ready(
        transition_forward(state_repre, actions, packed_bf16, use_residual=use_residual))
    assert out_bf16.shape == state_repre.shape
    assert jnp.allclose(out_bf16, ref, atol=1e-1, rtol=1e-1), "bf16 kernel mismatch"

    # Verification path: f32 MXU operands at HIGHEST precision, tight tolerance.
    packed_f32 = pack_params(raw, **dims, compute_dtype=jnp.float32)
    out_f32 = jax.block_until_ready(
        transition_forward(state_repre, actions, packed_f32, use_residual=use_residual))
    assert out_f32.shape == state_repre.shape
    assert jnp.allclose(out_f32, ref, atol=1e-4, rtol=1e-4), "f32 kernel mismatch"

    print("KERNEL_OK")
</pallas_src>

<mosaic_0001>
module attributes {stable_mosaic.version = 11 : i64} {
  func.func @transition_kernel(%arg0: i32, %arg1: memref<16x128xf32, #tpu.memory_space<vmem>>, %arg2: memref<128x42xbf16, #tpu.memory_space<vmem>>, %arg3: memref<1x42xf32, #tpu.memory_space<vmem>>, %arg4: memref<42x64xbf16, #tpu.memory_space<vmem>>, %arg5: memref<1x64xf32, #tpu.memory_space<vmem>>, %arg6: memref<64x32xbf16, #tpu.memory_space<vmem>>, %arg7: memref<1x32xf32, #tpu.memory_space<vmem>>, %arg8: memref<32x128xbf16, #tpu.memory_space<vmem>>, %arg9: memref<1x128xf32, #tpu.memory_space<vmem>>, %arg10: memref<16x128xf32, #tpu.memory_space<vmem>>) attributes {dimension_semantics = [#tpu.dimension_semantics<parallel>], iteration_bounds = array<i64: 1>, scalar_prefetch = 0 : i64, scratch_operands = 0 : i64, tpu.core_type = #tpu.core_type<tc>, window_params = [{transform_indices = @transform_0, window_bounds = array<i64: 16, 128>}, {pipeline_mode = #tpu.pipeline_mode<synchronous>, transform_indices = @transform_1, window_bounds = array<i64: 128, 42>}, {pipeline_mode = #tpu.pipeline_mode<synchronous>, transform_indices = @transform_2, window_bounds = array<i64: 1, 42>}, {pipeline_mode = #tpu.pipeline_mode<synchronous>, transform_indices = @transform_3, window_bounds = array<i64: 42, 64>}, {pipeline_mode = #tpu.pipeline_mode<synchronous>, transform_indices = @transform_4, window_bounds = array<i64: 1, 64>}, {pipeline_mode = #tpu.pipeline_mode<synchronous>, transform_indices = @transform_5, window_bounds = array<i64: 64, 32>}, {pipeline_mode = #tpu.pipeline_mode<synchronous>, transform_indices = @transform_6, window_bounds = array<i64: 1, 32>}, {pipeline_mode = #tpu.pipeline_mode<synchronous>, transform_indices = @transform_7, window_bounds = array<i64: 32, 128>}, {pipeline_mode = #tpu.pipeline_mode<synchronous>, transform_indices = @transform_8, window_bounds = array<i64: 1, 128>}, {transform_indices = @transform_9, window_bounds = array<i64: 16, 128>}]} {
    %c0 = arith.constant 0 : index
    %c0_0 = arith.constant 0 : index
    %0 = vector.load %arg1[%c0, %c0_0] : memref<16x128xf32, #tpu.memory_space<vmem>>, vector<16x128xf32>
    %1 = arith.truncf %0 : vector<16x128xf32> to vector<16x128xbf16>
    %c0_1 = arith.constant 0 : index
    %c0_2 = arith.constant 0 : index
    %2 = vector.load %arg2[%c0_1, %c0_2] : memref<128x42xbf16, #tpu.memory_space<vmem>>, vector<128x42xbf16>
    %cst = arith.constant dense<0.000000e+00> : vector<16x42xf32>
    %3 = tpu.matmul %1, %2, %cst {dimension_numbers = #tpu.dot_dimension_numbers<[1], [0], [0], [1], [0, 0, 1, 1], [], []>} : vector<16x128xbf16>, vector<128x42xbf16>, vector<16x42xf32> -> vector<16x42xf32>
    %c0_3 = arith.constant 0 : index
    %c0_4 = arith.constant 0 : index
    %4 = vector.load %arg3[%c0_3, %c0_4] : memref<1x42xf32, #tpu.memory_space<vmem>>, vector<1x42xf32>
    %5 = vector.broadcast %4 : vector<1x42xf32> to vector<16x42xf32>
    %6 = arith.addf %3, %5 : vector<16x42xf32>
    %7 = tpu.iota {dimensions = array<i32: 1>} : vector<16x42xi32>
    %c18_i32 = arith.constant 18 : i32
    %8 = vector.broadcast %c18_i32 : i32 to vector<16x42xi32>
    %9 = arith.cmpi sge, %7, %8 : vector<16x42xi32>
    %cst_5 = arith.constant 0.000000e+00 : f32
    %10 = vector.broadcast %cst_5 : f32 to vector<16x42xf32>
    %11 = arith.maximumf %6, %10 : vector<16x42xf32>
    %12 = arith.select %9, %11, %6 : vector<16x42xi1>, vector<16x42xf32>
    %13 = arith.truncf %12 : vector<16x42xf32> to vector<16x42xbf16>
    %c0_6 = arith.constant 0 : index
    %c0_7 = arith.constant 0 : index
    %14 = vector.load %arg4[%c0_6, %c0_7] : memref<42x64xbf16, #tpu.memory_space<vmem>>, vector<42x64xbf16>
    %cst_8 = arith.constant dense<0.000000e+00> : vector<16x64xf32>
    %15 = tpu.matmul %13, %14, %cst_8 {dimension_numbers = #tpu.dot_dimension_numbers<[1], [0], [0], [1], [0, 0, 1, 1], [], []>} : vector<16x42xbf16>, vector<42x64xbf16>, vector<16x64xf32> -> vector<16x64xf32>
    %c0_9 = arith.constant 0 : index
    %c0_10 = arith.constant 0 : index
    %16 = vector.load %arg5[%c0_9, %c0_10] : memref<1x64xf32, #tpu.memory_space<vmem>>, vector<1x64xf32>
    %17 = vector.broadcast %16 : vector<1x64xf32> to vector<16x64xf32>
    %18 = arith.addf %15, %17 : vector<16x64xf32>
    %cst_11 = arith.constant 0.000000e+00 : f32
    %19 = vector.broadcast %cst_11 : f32 to vector<16x64xf32>
    %20 = arith.maximumf %18, %19 : vector<16x64xf32>
    %21 = arith.truncf %20 : vector<16x64xf32> to vector<16x64xbf16>
    %c0_12 = arith.constant 0 : index
    %c0_13 = arith.constant 0 : index
    %22 = vector.load %arg6[%c0_12, %c0_13] : memref<64x32xbf16, #tpu.memory_space<vmem>>, vector<64x32xbf16>
    %cst_14 = arith.constant dense<0.000000e+00> : vector<16x32xf32>
    %23 = tpu.matmul %21, %22, %cst_14 {dimension_numbers = #tpu.dot_dimension_numbers<[1], [0], [0], [1], [0, 0, 1, 1], [], []>} : vector<16x64xbf16>, vector<64x32xbf16>, vector<16x32xf32> -> vector<16x32xf32>
    %c0_15 = arith.constant 0 : index
    %c0_16 = arith.constant 0 : index
    %24 = vector.load %arg7[%c0_15, %c0_16] : memref<1x32xf32, #tpu.memory_space<vmem>>, vector<1x32xf32>
    %25 = vector.broadcast %24 : vector<1x32xf32> to vector<16x32xf32>
    %26 = arith.addf %23, %25 : vector<16x32xf32>
    %cst_17 = arith.constant 0.000000e+00 : f32
    %27 = vector.broadcast %cst_17 : f32 to vector<16x32xf32>
    %28 = arith.maximumf %26, %27 : vector<16x32xf32>
    %29 = arith.truncf %28 : vector<16x32xf32> to vector<16x32xbf16>
    %c0_18 = arith.constant 0 : index
    %c0_19 = arith.constant 0 : index
    %30 = vector.load %arg8[%c0_18, %c0_19] : memref<32x128xbf16, #tpu.memory_space<vmem>>, vector<32x128xbf16>
    %cst_20 = arith.constant dense<0.000000e+00> : vector<16x128xf32>
    %31 = tpu.matmul %29, %30, %cst_20 {dimension_numbers = #tpu.dot_dimension_numbers<[1], [0], [0], [1], [0, 0, 1, 1], [], []>} : vector<16x32xbf16>, vector<32x128xbf16>, vector<16x128xf32> -> vector<16x128xf32>
    %c0_21 = arith.constant 0 : index
    %c0_22 = arith.constant 0 : index
    %32 = vector.load %arg9[%c0_21, %c0_22] : memref<1x128xf32, #tpu.memory_space<vmem>>, vector<1x128xf32>
    %33 = vector.broadcast %32 : vector<1x128xf32> to vector<16x128xf32>
    %34 = arith.addf %31, %33 : vector<16x128xf32>
    %35 = tpu.iota {dimensions = array<i32: 1>} : vector<16x128xi32>
    %c18_i32_23 = arith.constant 18 : i32
    %36 = vector.broadcast %c18_i32_23 : i32 to vector<16x128xi32>
    %37 = arith.cmpi slt, %35, %36 : vector<16x128xi32>
    %cst_24 = arith.constant 0.000000e+00 : f32
    %38 = vector.broadcast %cst_24 : f32 to vector<16x128xf32>
    %39 = arith.select %37, %0, %38 : vector<16x128xi1>, vector<16x128xf32>
    %40 = arith.addf %34, %39 : vector<16x128xf32>
    %c0_25 = arith.constant 0 : index
    %c0_26 = arith.constant 0 : index
    %41 = vector.load %arg10[%c0_25, %c0_26] : memref<16x128xf32, #tpu.memory_space<vmem>>, vector<16x128xf32>
    tpu.vector_store %arg10[%c0_25, %c0_26], %40 {strides = array<i32>} : memref<16x128xf32, #tpu.memory_space<vmem>>, vector<16x128xf32>,
    return
  }
  func.func @transform_0(%arg0: i32) -> (i32, i32) {
    %c0_i32 = arith.constant 0 : i32
    %c0_i32_0 = arith.constant 0 : i32
    return %arg0, %c0_i32 : i32, i32
  }
  func.func @transform_1(%arg0: i32) -> (i32, i32) {
    %c0_i32 = arith.constant 0 : i32
    %c0_i32_0 = arith.constant 0 : i32
    %c0_i32_1 = arith.constant 0 : i32
    return %c0_i32, %c0_i32_0 : i32, i32
  }
  func.func @transform_2(%arg0: i32) -> (i32, i32) {
    %c0_i32 = arith.constant 0 : i32
    %c0_i32_0 = arith.constant 0 : i32
    %c0_i32_1 = arith.constant 0 : i32
    return %c0_i32, %c0_i32_0 : i32, i32
  }
  func.func @transform_3(%arg0: i32) -> (i32, i32) {
    %c0_i32 = arith.constant 0 : i32
    %c0_i32_0 = arith.constant 0 : i32
    %c0_i32_1 = arith.constant 0 : i32
    return %c0_i32, %c0_i32_0 : i32, i32
  }
  func.func @transform_4(%arg0: i32) -> (i32, i32) {
    %c0_i32 = arith.constant 0 : i32
    %c0_i32_0 = arith.constant 0 : i32
    %c0_i32_1 = arith.constant 0 : i32
    return %c0_i32, %c0_i32_0 : i32, i32
  }
  func.func @transform_5(%arg0: i32) -> (i32, i32) {
    %c0_i32 = arith.constant 0 : i32
    %c0_i32_0 = arith.constant 0 : i32
    %c0_i32_1 = arith.constant 0 : i32
    return %c0_i32, %c0_i32_0 : i32, i32
  }
  func.func @transform_6(%arg0: i32) -> (i32, i32) {
    %c0_i32 = arith.constant 0 : i32
    %c0_i32_0 = arith.constant 0 : i32
    %c0_i32_1 = arith.constant 0 : i32
    return %c0_i32, %c0_i32_0 : i32, i32
  }
  func.func @transform_7(%arg0: i32) -> (i32, i32) {
    %c0_i32 = arith.constant 0 : i32
    %c0_i32_0 = arith.constant 0 : i32
    %c0_i32_1 = arith.constant 0 : i32
    return %c0_i32, %c0_i32_0 : i32, i32
  }
  func.func @transform_8(%arg0: i32) -> (i32, i32) {
    %c0_i32 = arith.constant 0 : i32
    %c0_i32_0 = arith.constant 0 : i32
    %c0_i32_1 = arith.constant 0 : i32
    return %c0_i32, %c0_i32_0 : i32, i32
  }
  func.func @transform_9(%arg0: i32) -> (i32, i32) {
    %c0_i32 = arith.constant 0 : i32
    %c0_i32_0 = arith.constant 0 : i32
    return %arg0, %c0_i32 : i32, i32
  }
}

</mosaic_0001>

<bundles_post_ra>
// kernel: tpu_custom_call.1
= control target key start
LH: loop header
LB: loop body
LE: loop exit
PB: predicated region body
PF: predicated region fallthrough
CT: control target
= control target key end

     0   :  { %s556_s0 = inlined_call_operand.vmem [shape: f32[16,128], index: 0, kind: input, shape index: {}]   ;;  %s557_s1 = inlined_call_operand.vmem [shape: bf16[128,42], index: 1, kind: input, shape index: {}]   ;;  %s558_s2 = inlined_call_operand.vmem [shape: f32[1,42], index: 2, kind: input, shape index: {}]   ;;  %s559_s3 = inlined_call_operand.vmem [shape: bf16[42,64], index: 3, kind: input, shape index: {}]   ;;  %s560_s4 = inlined_call_operand.vmem [shape: f32[1,64], index: 4, kind: input, shape index: {}]   ;;  %s561_s5 = inlined_call_operand.vmem [shape: bf16[64,32], index: 5, kind: input, shape index: {}]   ;;  %s562_s6 = inlined_call_operand.vmem [shape: f32[1,32], index: 6, kind: input, shape index: {}]   ;;  %s563_s7 = inlined_call_operand.vmem [shape: bf16[32,128], index: 7, kind: input, shape index: {}]   ;;  %s564_s8 = inlined_call_operand.vmem [shape: f32[1,128], index: 8, kind: input, shape index: {}]   ;;  %s565_s9 = inlined_call_operand.hbm [shape: f32[16,128], index: 9, kind: output, shape index: {}]  }
   0x1   :  { %v377_v0 = vld [vmem:[%s557_s1 + $0x38] sm:$0xff]  ;;  %v376_v1 = vld [vmem:[%s557_s1 + $0x30] sm:$0xff] }
   0x2   :  { %105 = vmatpush.bf16.msra.mxu0 %v377_v0 }
   0x3   :  { %14 = vsyncpa [#allocation3], 0  ;;  %v375_v2 = vld [vmem:[%s557_s1 + $0x28] sm:$0xff]  ;;  %v374_v3 = vld [vmem:[%s557_s1 + $0x20] sm:$0xff]  ;;  %vm158_vm0 = vcmask 1044480   ;;  %v119_v19 = vlaneseq  ;;  %vm154_vm2 = vcmask 343040  }
   0x4   :  { %v373_v4 = vld [vmem:[%s557_s1 + $0x18] sm:$0xff]  ;;  %v372_v5 = vld [vmem:[%s557_s1 + $0x10] sm:$0xff]  ;;  %v371_v6 = vld [vmem:[%s557_s1 + $0x8] sm:$0xff]  ;;  %vm215_vm3 = vcmask 523264   ;;  %vm256_vm4 = vcmask 261120   ;;  %s287_s10 = sshll.u32 %s565_s9, 4  ;;  %s288_s10 = int_to_ptr.hbm [resolvable:$true] %s287_s10 }
   0x5   :  { %v370_v7 = vld [vmem:[%s557_s1] sm:$0xff]  ;;  %v505_v9 = vld [vmem:[%s556_s0 + $0x8] sm:$0xff]  ;;  %v341_v11 = vld [vmem:[%s559_s3 + $0x10] sm:$0xf]  ;;  %v120_v21 = vand.u32 127, %v119_v19  ;;  %s422_s11 = smov 8  }
   0x6   :  { %106 = vmatpush.bf16.msra.mxu0 %v376_v1  ;;  %v500_v8 = vld [vmem:[%s556_s0] sm:$0xff]  ;;  %v380_v12 = vld [vmem:[%s559_s3 + $0x10] sm:$0x10]  ;;  %v379_v15 = vld [vmem:[%s559_s3 + $0x8] sm:$0xff] }
   0x7   :  { %v36_v10 = vpack.c.bf16 %v505_v9, %v500_v8  ;;  %v342_v13 = vor.u32 %v380_v12, %v341_v11  ;;  %v378_v16 = vld [vmem:[%s559_s3] sm:$0xff]  ;;  %vm121_vm1 = vcmp.ge.s32.totalorder %v120_v21, 18  ;;  %v384_v29 = vld [vmem:[%s561_s5 + $0x18] sm:$0xff]  ;;  %v383_v30 = vld [vmem:[%s561_s5 + $0x10] sm:$0xff]  ;;  %vm274_vm5 = vcmp.lt.s32.totalorder %v120_v21, 18 }
   0x8   :  { %v390_v18 = vld [vmem:[%s558_s2] ss:$0 sm:$0xff]  ;;  %223 = vmatpush.bf16.msra.mxu2 %v384_v29  ;;  %v382_v31 = vld [vmem:[%s561_s5 + $0x8] sm:$0xff]  ;;  %v275_v53 = vsel %vm274_vm5, %v500_v8, 0.0  ;;  %v276_v57 = vsel %vm274_vm5, %v505_v9, 0.0 }
   0x9   :  { %v160_v14 = vsel %vm158_vm0, %v342_v13, 0  ;;  %v381_v32 = vld [vmem:[%s561_s5] sm:$0xff]  ;;  %v386_v41 = vld [vmem:[%s563_s7 + $0x8] sm:$0xff] }
   0xa   :  { %107 = vmatpush.bf16.msra.mxu0 %v375_v2  ;;  %167 = vmatpush.bf16.msra.mxu1 %v160_v14  ;;  %v391_v34 = vld [vmem:[%s560_s4] ss:$0 sm:$0xff] }
   0xb   :  { %266 = vmatpush.bf16.msra.mxu3 %v386_v41  ;;  %v385_v42 = vld [vmem:[%s563_s7] sm:$0xff] }
   0xc   :  { %224 = vmatpush.bf16.msra.mxu2 %v383_v30  ;;  %v392_v44 = vld [vmem:[%s562_s6] ss:$0 sm:$0xff]  ;;  %s420_s6 = smov [#allocation2]  }
   0xd   :  { %v393_v51 = vld [vmem:[%s564_s8] ss:$0 sm:$0xff]  ;;  %s285_s7 = sshll.u32 %s420_s6, 4  ;;  %s421_s8 = smov 128   ;;  %s286_s7 = int_to_ptr.vmem [resolvable:$true] %s285_s7 }
   0xe   :  { %108 = vmatpush.bf16.msra.mxu0 %v374_v3  ;;  %168 = vmatpush.bf16.msra.mxu1 %v379_v15 }
   0xf   :  { %267 = vmatpush.bf16.msra.mxu3 %v385_v42 }
  0x10   :  { %225 = vmatpush.bf16.msra.mxu2 %v382_v31 }
  0x12   :  { %109 = vmatpush.bf16.msra.mxu0 %v373_v4  ;;  %169 = vmatpush.bf16.msra.mxu1 %v378_v16 }
  0x14   :  { %226 = vmatpush.bf16.msra.mxu2 %v381_v32 }
  0x16   :  { %110 = vmatpush.bf16.msra.mxu0 %v372_v5 }
  0x1a   :  { %111 = vmatpush.bf16.msra.mxu0 %v371_v6 }
  0x1e   :  { %112 = vmatpush.bf16.msra.mxu0 %v370_v7 }
  0x21   :  { %113 = vmatmul.bf16.vlgmr.msra.gmra.mxu0 %v36_v10 }
  0x9e   :  { %v114_v17 = vpop.f32.mrf.mxu0 }
  0x9f   :  { %v115_v20 = vadd.f32 %v390_v18, %v114_v17 }
  0xa1   :  { %v122_v23 = vmax.f32 %v115_v20, 0.0 }
  0xa3   :  { %v124_v26 = vsel %vm121_vm1, %v122_v23, %v115_v20 }
  0xa6   :  { %v116_v22 = vpop.f32.mrf.mxu0 }
  0xa7   :  { %v117_v24 = vadd.f32 %v390_v18, %v116_v22 }
  0xa9   :  { %v123_v25 = vmax.f32 %v117_v24, 0.0 }
  0xab   :  { %v125_v27 = vsel %vm121_vm1, %v123_v25, %v117_v24 }
  0xac   :  { %v126_v28 = vpack.c.bf16 %v125_v27, %v124_v26 }
  0xae   :  { %343 = vmatmul.msk.bf16.vlgmr.msra.gmra.mxu1 %vm154_vm2, %v126_v28 }
 0x12b   :  { %v171_v33 = vpop.f32.mrf.mxu1 }
 0x12c   :  { %v172_v35 = vadd.f32 %v391_v34, %v171_v33 }
 0x12e   :  { %v176_v38 = vmax.f32 %v172_v35, 0.0 }
 0x133   :  { %v173_v36 = vpop.f32.mrf.mxu1 }
 0x134   :  { %v174_v37 = vadd.f32 %v391_v34, %v173_v36 }
 0x136   :  { %v177_v39 = vmax.f32 %v174_v37, 0.0 }
 0x138   :  { %v178_v40 = vpack.c.bf16 %v177_v39, %v176_v38 }
 0x13a   :  { %360 = vmatmul.msk.bf16.vlgmr.msra.gmra.mxu2 %vm215_vm3, %v178_v40 }
 0x1bd   :  { %v228_v43 = vpop.f32.mrf.mxu2 }
 0x1be   :  { %v229_v45 = vadd.f32 %v392_v44, %v228_v43 }
 0x1c0   :  { %v233_v48 = vmax.f32 %v229_v45, 0.0 }
 0x1c5   :  { %v230_v46 = vpop.f32.mrf.mxu2 }
 0x1c6   :  { %v231_v47 = vadd.f32 %v392_v44, %v230_v46 }
 0x1c8   :  { %v234_v49 = vmax.f32 %v231_v47, 0.0 }
 0x1ca   :  { %v235_v50 = vpack.c.bf16 %v234_v49, %v233_v48 }
 0x1cc   :  { %369 = vmatmul.msk.bf16.vlgmr.msra.gmra.mxu3 %vm256_vm4, %v235_v50 }
 0x24f   :  { %v269_v52 = vpop.f32.mrf.mxu3 }
 0x250   :  { %v270_v54 = vadd.f32 %v393_v51, %v269_v52 }
 0x252   :  { %v277_v55 = vadd.f32 %v275_v53, %v270_v54 }
 0x254   :  { %279 = vst [vmem:[#allocation2] sm:$0xff] %v277_v55 }
 0x257   :  { %v271_v56 = vpop.f32.mrf.mxu3 }
 0x258   :  { %v272_v58 = vadd.f32 %v393_v51, %v271_v56 }
 0x25a   :  { %v278_v59 = vadd.f32 %v276_v57, %v272_v58 }
 0x25c   :  { %280 = vst [vmem:[#allocation2 + $0x8] sm:$0xff] %v278_v59 }
 0x25d   :  { %293 = dma.vmem_to_hbm [thread:$0]  %s286_s7, 256, %s288_s10, [#allocation3], %s421_s8, %s421_s8, %s422_s11  }
 0x25e   :  { %418 = dma.done.wait [#allocation3], 256  }
 0x25f   :  { %419 = vsyncadd [#allocation3], 4294967040 }
 0x260   :  { %298 = vsyncpa [#allocation3], 1 }

</bundles_post_ra>
